<compile_context>
chip_gen: v5e
topology: v5e:2x2
jax: 0.10.0
libtpu: 0.0.40
codegen_flags: <defaults>
</compile_context>

<pallas_src>
import functools

import jax
import jax.numpy as jnp
from jax import lax
from jax.experimental import pallas as pl
from jax.experimental.pallas import tpu as pltpu


def _round_up(n, m):
    return ((n + m - 1) // m) * m


def _robot_kernel(x2d_ref, wih_ref, whh_ref, b_ref, wfc_ref, bfc_ref,
                  out_ref, hs_ref, *, seq_len, batch, hg):
    """Whole forward pass in one kernel invocation.

    x2d_ref : (S*B, I)     time-major flattened input
    wih_ref : (I, Gp)      packed W_ih^T  (Gp = 4*Hg = 128, 0.5-fold on i/f/o)
    whh_ref : (Gp, Gp)     packed W_hh^T  (rows >= H are exact zeros)
    b_ref   : (1, Gp)      packed (b_ih + b_hh), 0.5-fold on i/f/o
    wfc_ref : (Gp, Op)     packed W_fc^T  (rows >= H are exact zeros)
    bfc_ref : (1, Op)      packed b_fc
    out_ref : (S*B, Op)    time-major flattened output (lane-dense)
    hs_ref  : (S*B, Gp)    VMEM scratch for the per-step hidden states
    """
    S, B, Hg = seq_len, batch, hg
    Gp = whh_ref.shape[1]                       # 4 * Hg == 128 (one lane slab)

    # Hoisted input projection for ALL timesteps (one MXU pass); bias and the
    # sigmoid 0.5-argument scale are already folded in at pack time.
    xp = jnp.dot(x2d_ref[...], wih_ref[...],
                 preferred_element_type=jnp.float32) + b_ref[...]     # (S*B, Gp)
    whh = whh_ref[...]                                                # (Gp, Gp)
    # NOTE: whh is a single (128,128) MXU tile; Mosaic can keep it resident
    # across the serial steps.  Explicit weight-stationary driving via
    # pltpu.matmul_push_rhs / matmul_acc_lhs / matmul_pop is a possible further
    # refinement once the bundle confirms a re-push per step.

    # Per-lane affine turning tanh(z) into the right nonlinearity per gate slab
    # (PyTorch gate order i, f, g, o packed at lane offsets 0/Hg/2Hg/3Hg):
    #   sigmoid slabs (i, f, o): 0.5 * tanh(z) + 0.5   (z is already 0.5*preact)
    #   tanh slab     (g)      : 1.0 * tanh(z) + 0.0
    lane = lax.broadcasted_iota(jnp.int32, (1, Gp), 1)
    is_g_slab = (lane >= 2 * Hg) & (lane < 3 * Hg)
    aff_a = jnp.where(is_g_slab, 1.0, 0.5).astype(jnp.float32)
    aff_b = jnp.where(is_g_slab, 0.0, 0.5).astype(jnp.float32)

    h = jnp.zeros((B, Gp), jnp.float32)
    c = jnp.zeros((B, Gp), jnp.float32)

    # Serial recurrence: per step ONE single-tile matmul + ONE tanh over the
    # packed gate vector + cheap VPU/XLU work.  (S=8, fully unrolled.)
    for t in range(S):
        z = xp[t * B:(t + 1) * B, :] + jnp.dot(
            h, whh, preferred_element_type=jnp.float32)               # (B, Gp)
        act = jnp.tanh(z) * aff_a + aff_b                             # all 4 gates
        # Lane-align f / g / o onto the i slab with XLU rolls (positive shifts).
        act_f = pltpu.roll(act, shift=Gp - 1 * Hg, axis=1)
        act_g = pltpu.roll(act, shift=Gp - 2 * Hg, axis=1)
        act_o = pltpu.roll(act, shift=Gp - 3 * Hg, axis=1)
        # Only lanes [0, Hg) are meaningful below; junk lanes stay bounded and
        # only ever multiply exactly-zero weight rows downstream.
        c = act_f * c + act * act_g
        h = act_o * jnp.tanh(c)
        hs_ref[t * B:(t + 1) * B, :] = h       # stream to scratch (vst slot)

    # Hoisted head: sigmoid -> Linear -> sigmoid as one batched matmul.
    # (Padded/junk h lanes give sigmoid(..) in (0,1) but hit zero W_fc rows.)
    s = jax.nn.sigmoid(hs_ref[...])
    y = jnp.dot(s, wfc_ref[...], preferred_element_type=jnp.float32) + bfc_ref[...]
    out_ref[...] = jax.nn.sigmoid(y).astype(out_ref.dtype)            # lane-dense store


@functools.partial(jax.jit, static_argnames=("out_class",))
def _forward_jit(x, wih, whh, b, wfc, bfc, *, out_class):
    """Single jit: layout plumbing + pallas_call + output slice all fuse."""
    B, S, I = x.shape
    Gp = whh.shape[1]
    Hg = Gp // 4
    Op = wfc.shape[1]

    # Tiny layout plumbing: time-major flatten so timestep t's rows are the
    # contiguous block [t*B, (t+1)*B).
    x2d = jnp.transpose(x, (1, 0, 2)).reshape(S * B, I)

    kernel = functools.partial(_robot_kernel, seq_len=S, batch=B, hg=Hg)

    out2d = pl.pallas_call(
        kernel,
        out_shape=jax.ShapeDtypeStruct((S * B, Op), jnp.float32),
        in_specs=[pl.BlockSpec(memory_space=pltpu.MemorySpace.VMEM)] * 6,
        out_specs=pl.BlockSpec(memory_space=pltpu.MemorySpace.VMEM),
        scratch_shapes=[pltpu.VMEM((S * B, Gp), jnp.float32)],
    )(x2d, wih, whh, b, wfc, bfc)

    out = out2d.reshape(S, B, Op)[:, :, :out_class]   # drop lane padding
    return jnp.transpose(out, (1, 0, 2))              # (B, S, out_class)
    # TODO(synk): for large batch / many independent sequences, add a leading
    # "parallel" grid axis over batch so v7x's two TensorCores each run their
    # own recurrence; footprint (<1 MiB) needs no tiling change.


def robot_model_forward(x, packed):
    """x: (B, S, I) float32 (batch_first, like the PyTorch module).
    Returns (B, S, out_class) float32."""
    return _forward_jit(x, packed["wih"], packed["whh"], packed["b"],
                        packed["wfc"], packed["bfc"], out_class=packed["O"])


def init_params(key, input_size=3, hidden_size=25, out_class=6):
    """PyTorch-layout parameters, uniform(+/- 1/sqrt(H)) like nn.LSTM/nn.Linear."""
    k = 1.0 / jnp.sqrt(jnp.float32(hidden_size))
    keys = jax.random.split(key, 6)
    return {
        "w_ih": jax.random.uniform(keys[0], (4 * hidden_size, input_size), jnp.float32, -k, k),
        "w_hh": jax.random.uniform(keys[1], (4 * hidden_size, hidden_size), jnp.float32, -k, k),
        "b_ih": jax.random.uniform(keys[2], (4 * hidden_size,), jnp.float32, -k, k),
        "b_hh": jax.random.uniform(keys[3], (4 * hidden_size,), jnp.float32, -k, k),
        "w_fc": jax.random.uniform(keys[4], (out_class, hidden_size), jnp.float32, -k, k),
        "b_fc": jax.random.uniform(keys[5], (out_class,), jnp.float32, -k, k),
    }


def pack_params(raw):
    """Pad/transpose PyTorch-layout weights into the packed kernel layout.

    All four LSTM gates (PyTorch order i, f, g, o) share ONE 128-lane slab
    (Hg=32 lanes per gate), so the recurrent matmul is a single MXU tile per
    step.  The exact sigmoid identity sigmoid(x) = 0.5*(1 + tanh(0.5*x)) is
    used in-kernel, with the 0.5 argument scale folded into the i/f/o gate
    weights and biases here.  Padded rows/cols are exact zeros so padded /
    junk h,c lanes never perturb the real H columns (including through the FC
    head's sigmoid(0)=0.5 path — W_fc rows >= H are exact zeros).
    """
    w_ih, w_hh = raw["w_ih"], raw["w_hh"]
    b = raw["b_ih"] + raw["b_hh"]
    w_fc, b_fc = raw["w_fc"], raw["b_fc"]
    H = w_hh.shape[1]
    I = w_ih.shape[1]
    O = w_fc.shape[0]
    assert H <= 32, "single-slab gate packing assumes hidden_size <= 32"
    # TODO(synk): for hidden_size > 32 fall back to per-gate 128-lane slabs.
    Hg = 32
    Gp = 4 * Hg                   # 128: one lane slab for all gates
    Op = _round_up(O, 128)

    gate_scale = [0.5, 0.5, 1.0, 0.5]     # 0.5-fold for sigmoid gates i, f, o

    wih_pad = jnp.zeros((I, Gp), jnp.float32)
    whh_pad = jnp.zeros((Gp, Gp), jnp.float32)
    b_pad = jnp.zeros((1, Gp), jnp.float32)
    for g in range(4):                    # PyTorch gate order i, f, g, o
        sc = gate_scale[g]
        wih_pad = wih_pad.at[:, g * Hg:g * Hg + H].set(sc * w_ih[g * H:(g + 1) * H, :].T)
        whh_pad = whh_pad.at[:H, g * Hg:g * Hg + H].set(sc * w_hh[g * H:(g + 1) * H, :].T)
        b_pad = b_pad.at[0, g * Hg:g * Hg + H].set(sc * b[g * H:(g + 1) * H])

    wfc_pad = jnp.zeros((Gp, Op), jnp.float32).at[:H, :O].set(w_fc.T)
    bfc_pad = jnp.zeros((1, Op), jnp.float32).at[0, :O].set(b_fc)

    return {"wih": wih_pad, "whh": whh_pad, "b": b_pad,
            "wfc": wfc_pad, "bfc": bfc_pad,
            "H": H, "Hg": Hg, "Gp": Gp, "O": O, "Op": Op}


def reference_forward(x, raw):
    """Pure-JAX reference (lax.scan LSTM) on the unpadded PyTorch-layout params."""
    H = raw["w_hh"].shape[1]
    wih_t = raw["w_ih"].T
    whh_t = raw["w_hh"].T
    b = raw["b_ih"] + raw["b_hh"]

    def step(carry, x_t):
        h, c = carry
        gates = x_t @ wih_t + h @ whh_t + b
        i = jax.nn.sigmoid(gates[:, 0 * H:1 * H])
        f = jax.nn.sigmoid(gates[:, 1 * H:2 * H])
        g = jnp.tanh(gates[:, 2 * H:3 * H])
        o = jax.nn.sigmoid(gates[:, 3 * H:4 * H])
        c = f * c + i * g
        h = o * jnp.tanh(c)
        return (h, c), h

    B = x.shape[0]
    h0 = jnp.zeros((B, H), jnp.float32)
    c0 = jnp.zeros((B, H), jnp.float32)
    _, hs = lax.scan(step, (h0, c0), jnp.transpose(x, (1, 0, 2)))   # (S, B, H)
    hs = jnp.transpose(hs, (1, 0, 2))                               # (B, S, H)
    s = jax.nn.sigmoid(hs)
    y = s @ raw["w_fc"].T + raw["b_fc"]
    return jax.nn.sigmoid(y)


if __name__ == "__main__":
    B, S, I, H, O = 2, 8, 3, 25, 6   # batch, seq, input_size, hidden_size, out_class
    key = jax.random.PRNGKey(0)
    kx, kp = jax.random.split(key)
    x = jax.random.normal(kx, (B, S, I), dtype=jnp.float32)
    raw = init_params(kp, input_size=I, hidden_size=H, out_class=O)
    packed = pack_params(raw)

    out = jax.block_until_ready(robot_model_forward(x, packed))
    ref = jax.block_until_ready(reference_forward(x, raw))

    assert out.shape == (B, S, O), out.shape
    max_err = float(jnp.max(jnp.abs(out - ref)))
    assert jnp.allclose(out, ref, atol=1e-5, rtol=1e-5), max_err

    print("KERNEL_OK")
</pallas_src>

<mosaic_0001>
module attributes {stable_mosaic.version = 11 : i64} {
  func.func @_robot_kernel(%arg0: memref<16x3xf32, #tpu.memory_space<vmem>>, %arg1: memref<3x128xf32, #tpu.memory_space<vmem>>, %arg2: memref<128x128xf32, #tpu.memory_space<vmem>>, %arg3: memref<1x128xf32, #tpu.memory_space<vmem>>, %arg4: memref<128x128xf32, #tpu.memory_space<vmem>>, %arg5: memref<1x128xf32, #tpu.memory_space<vmem>>, %arg6: memref<16x128xf32, #tpu.memory_space<vmem>>, %arg7: memref<16x128xf32, #tpu.memory_space<vmem>>) attributes {dimension_semantics = [], scalar_prefetch = 0 : i64, scratch_operands = 1 : i64, tpu.core_type = #tpu.core_type<tc>} {
    %c0 = arith.constant 0 : index
    %c0_0 = arith.constant 0 : index
    %0 = vector.load %arg0[%c0, %c0_0] : memref<16x3xf32, #tpu.memory_space<vmem>>, vector<16x3xf32>
    %c0_1 = arith.constant 0 : index
    %c0_2 = arith.constant 0 : index
    %1 = vector.load %arg1[%c0_1, %c0_2] : memref<3x128xf32, #tpu.memory_space<vmem>>, vector<3x128xf32>
    %cst = arith.constant dense<0.000000e+00> : vector<16x128xf32>
    %2 = tpu.matmul %0, %1, %cst {dimension_numbers = #tpu.dot_dimension_numbers<[1], [0], [0], [1], [0, 0, 1, 1], [], []>} : vector<16x3xf32>, vector<3x128xf32>, vector<16x128xf32> -> vector<16x128xf32>
    %c0_3 = arith.constant 0 : index
    %c0_4 = arith.constant 0 : index
    %3 = vector.load %arg3[%c0_3, %c0_4] : memref<1x128xf32, #tpu.memory_space<vmem>>, vector<1x128xf32>
    %4 = vector.broadcast %3 : vector<1x128xf32> to vector<16x128xf32>
    %5 = arith.addf %2, %4 : vector<16x128xf32>
    %c0_5 = arith.constant 0 : index
    %c0_6 = arith.constant 0 : index
    %6 = vector.load %arg2[%c0_5, %c0_6] : memref<128x128xf32, #tpu.memory_space<vmem>>, vector<128x128xf32>
    %7 = tpu.iota {dimensions = array<i32: 1>} : vector<1x128xi32>
    %c64_i32 = arith.constant 64 : i32
    %8 = vector.broadcast %c64_i32 : i32 to vector<1x128xi32>
    %9 = arith.cmpi sge, %7, %8 : vector<1x128xi32>
    %c96_i32 = arith.constant 96 : i32
    %10 = vector.broadcast %c96_i32 : i32 to vector<1x128xi32>
    %11 = arith.cmpi slt, %7, %10 : vector<1x128xi32>
    %12 = arith.andi %9, %11 : vector<1x128xi1>
    %cst_7 = arith.constant 1.000000e+00 : f32
    %cst_8 = arith.constant 5.000000e-01 : f32
    %13 = vector.broadcast %cst_7 : f32 to vector<1x128xf32>
    %14 = vector.broadcast %cst_8 : f32 to vector<1x128xf32>
    %15 = arith.select %12, %13, %14 : vector<1x128xi1>, vector<1x128xf32>
    %cst_9 = arith.constant 0.000000e+00 : f32
    %cst_10 = arith.constant 5.000000e-01 : f32
    %16 = vector.broadcast %cst_9 : f32 to vector<1x128xf32>
    %17 = vector.broadcast %cst_10 : f32 to vector<1x128xf32>
    %18 = arith.select %12, %16, %17 : vector<1x128xi1>, vector<1x128xf32>
    %cst_11 = arith.constant 0.000000e+00 : f32
    %19 = vector.broadcast %cst_11 : f32 to vector<2x128xf32>
    %cst_12 = arith.constant 0.000000e+00 : f32
    %20 = vector.broadcast %cst_12 : f32 to vector<2x128xf32>
    %21 = vector.extract_strided_slice %5 {offsets = [0, 0], sizes = [2, 128], strides = [1, 1]} : vector<16x128xf32> to vector<2x128xf32>
    %cst_13 = arith.constant dense<0.000000e+00> : vector<2x128xf32>
    %22 = tpu.matmul %19, %6, %cst_13 {dimension_numbers = #tpu.dot_dimension_numbers<[1], [0], [0], [1], [0, 0, 1, 1], [], []>} : vector<2x128xf32>, vector<128x128xf32>, vector<2x128xf32> -> vector<2x128xf32>
    %23 = arith.addf %21, %22 : vector<2x128xf32>
    %24 = math.tanh %23 : vector<2x128xf32>
    %25 = vector.broadcast %15 : vector<1x128xf32> to vector<2x128xf32>
    %26 = arith.mulf %24, %25 : vector<2x128xf32>
    %27 = vector.broadcast %18 : vector<1x128xf32> to vector<2x128xf32>
    %28 = arith.addf %26, %27 : vector<2x128xf32>
    %c96_i32_14 = arith.constant 96 : i32
    %29 = tpu.dynamic_rotate %28 by %c96_i32_14 dim 1 : vector<2x128xf32>, i32 -> vector<2x128xf32>
    %c64_i32_15 = arith.constant 64 : i32
    %30 = tpu.dynamic_rotate %28 by %c64_i32_15 dim 1 : vector<2x128xf32>, i32 -> vector<2x128xf32>
    %c32_i32 = arith.constant 32 : i32
    %31 = tpu.dynamic_rotate %28 by %c32_i32 dim 1 : vector<2x128xf32>, i32 -> vector<2x128xf32>
    %32 = arith.mulf %29, %20 : vector<2x128xf32>
    %33 = arith.mulf %28, %30 : vector<2x128xf32>
    %34 = arith.addf %32, %33 : vector<2x128xf32>
    %35 = math.tanh %34 : vector<2x128xf32>
    %36 = arith.mulf %31, %35 : vector<2x128xf32>
    %c0_16 = arith.constant 0 : index
    %c0_17 = arith.constant 0 : index
    %37 = vector.load %arg7[%c0_16, %c0_17] : memref<16x128xf32, #tpu.memory_space<vmem>>, vector<2x128xf32>
    tpu.vector_store %arg7[%c0_16, %c0_17], %36 {strides = array<i32>} : memref<16x128xf32, #tpu.memory_space<vmem>>, vector<2x128xf32>,
    %38 = vector.extract_strided_slice %5 {offsets = [2, 0], sizes = [2, 128], strides = [1, 1]} : vector<16x128xf32> to vector<2x128xf32>
    %cst_18 = arith.constant dense<0.000000e+00> : vector<2x128xf32>
    %39 = tpu.matmul %36, %6, %cst_18 {dimension_numbers = #tpu.dot_dimension_numbers<[1], [0], [0], [1], [0, 0, 1, 1], [], []>} : vector<2x128xf32>, vector<128x128xf32>, vector<2x128xf32> -> vector<2x128xf32>
    %40 = arith.addf %38, %39 : vector<2x128xf32>
    %41 = math.tanh %40 : vector<2x128xf32>
    %42 = vector.broadcast %15 : vector<1x128xf32> to vector<2x128xf32>
    %43 = arith.mulf %41, %42 : vector<2x128xf32>
    %44 = vector.broadcast %18 : vector<1x128xf32> to vector<2x128xf32>
    %45 = arith.addf %43, %44 : vector<2x128xf32>
    %c96_i32_19 = arith.constant 96 : i32
    %46 = tpu.dynamic_rotate %45 by %c96_i32_19 dim 1 : vector<2x128xf32>, i32 -> vector<2x128xf32>
    %c64_i32_20 = arith.constant 64 : i32
    %47 = tpu.dynamic_rotate %45 by %c64_i32_20 dim 1 : vector<2x128xf32>, i32 -> vector<2x128xf32>
    %c32_i32_21 = arith.constant 32 : i32
    %48 = tpu.dynamic_rotate %45 by %c32_i32_21 dim 1 : vector<2x128xf32>, i32 -> vector<2x128xf32>
    %49 = arith.mulf %46, %34 : vector<2x128xf32>
    %50 = arith.mulf %45, %47 : vector<2x128xf32>
    %51 = arith.addf %49, %50 : vector<2x128xf32>
    %52 = math.tanh %51 : vector<2x128xf32>
    %53 = arith.mulf %48, %52 : vector<2x128xf32>
    %c2 = arith.constant 2 : index
    %c0_22 = arith.constant 0 : index
    %54 = vector.load %arg7[%c2, %c0_22] : memref<16x128xf32, #tpu.memory_space<vmem>>, vector<2x128xf32>
    tpu.vector_store %arg7[%c2, %c0_22], %53 {strides = array<i32>} : memref<16x128xf32, #tpu.memory_space<vmem>>, vector<2x128xf32>,
    %55 = vector.extract_strided_slice %5 {offsets = [4, 0], sizes = [2, 128], strides = [1, 1]} : vector<16x128xf32> to vector<2x128xf32>
    %cst_23 = arith.constant dense<0.000000e+00> : vector<2x128xf32>
    %56 = tpu.matmul %53, %6, %cst_23 {dimension_numbers = #tpu.dot_dimension_numbers<[1], [0], [0], [1], [0, 0, 1, 1], [], []>} : vector<2x128xf32>, vector<128x128xf32>, vector<2x128xf32> -> vector<2x128xf32>
    %57 = arith.addf %55, %56 : vector<2x128xf32>
    %58 = math.tanh %57 : vector<2x128xf32>
    %59 = vector.broadcast %15 : vector<1x128xf32> to vector<2x128xf32>
    %60 = arith.mulf %58, %59 : vector<2x128xf32>
    %61 = vector.broadcast %18 : vector<1x128xf32> to vector<2x128xf32>
    %62 = arith.addf %60, %61 : vector<2x128xf32>
    %c96_i32_24 = arith.constant 96 : i32
    %63 = tpu.dynamic_rotate %62 by %c96_i32_24 dim 1 : vector<2x128xf32>, i32 -> vector<2x128xf32>
    %c64_i32_25 = arith.constant 64 : i32
    %64 = tpu.dynamic_rotate %62 by %c64_i32_25 dim 1 : vector<2x128xf32>, i32 -> vector<2x128xf32>
    %c32_i32_26 = arith.constant 32 : i32
    %65 = tpu.dynamic_rotate %62 by %c32_i32_26 dim 1 : vector<2x128xf32>, i32 -> vector<2x128xf32>
    %66 = arith.mulf %63, %51 : vector<2x128xf32>
    %67 = arith.mulf %62, %64 : vector<2x128xf32>
    %68 = arith.addf %66, %67 : vector<2x128xf32>
    %69 = math.tanh %68 : vector<2x128xf32>
    %70 = arith.mulf %65, %69 : vector<2x128xf32>
    %c4 = arith.constant 4 : index
    %c0_27 = arith.constant 0 : index
    %71 = vector.load %arg7[%c4, %c0_27] : memref<16x128xf32, #tpu.memory_space<vmem>>, vector<2x128xf32>
    tpu.vector_store %arg7[%c4, %c0_27], %70 {strides = array<i32>} : memref<16x128xf32, #tpu.memory_space<vmem>>, vector<2x128xf32>,
    %72 = vector.extract_strided_slice %5 {offsets = [6, 0], sizes = [2, 128], strides = [1, 1]} : vector<16x128xf32> to vector<2x128xf32>
    %cst_28 = arith.constant dense<0.000000e+00> : vector<2x128xf32>
    %73 = tpu.matmul %70, %6, %cst_28 {dimension_numbers = #tpu.dot_dimension_numbers<[1], [0], [0], [1], [0, 0, 1, 1], [], []>} : vector<2x128xf32>, vector<128x128xf32>, vector<2x128xf32> -> vector<2x128xf32>
    %74 = arith.addf %72, %73 : vector<2x128xf32>
    %75 = math.tanh %74 : vector<2x128xf32>
    %76 = vector.broadcast %15 : vector<1x128xf32> to vector<2x128xf32>
    %77 = arith.mulf %75, %76 : vector<2x128xf32>
    %78 = vector.broadcast %18 : vector<1x128xf32> to vector<2x128xf32>
    %79 = arith.addf %77, %78 : vector<2x128xf32>
    %c96_i32_29 = arith.constant 96 : i32
    %80 = tpu.dynamic_rotate %79 by %c96_i32_29 dim 1 : vector<2x128xf32>, i32 -> vector<2x128xf32>
    %c64_i32_30 = arith.constant 64 : i32
    %81 = tpu.dynamic_rotate %79 by %c64_i32_30 dim 1 : vector<2x128xf32>, i32 -> vector<2x128xf32>
    %c32_i32_31 = arith.constant 32 : i32
    %82 = tpu.dynamic_rotate %79 by %c32_i32_31 dim 1 : vector<2x128xf32>, i32 -> vector<2x128xf32>
    %83 = arith.mulf %80, %68 : vector<2x128xf32>
    %84 = arith.mulf %79, %81 : vector<2x128xf32>
    %85 = arith.addf %83, %84 : vector<2x128xf32>
    %86 = math.tanh %85 : vector<2x128xf32>
    %87 = arith.mulf %82, %86 : vector<2x128xf32>
    %c6 = arith.constant 6 : index
    %c0_32 = arith.constant 0 : index
    %88 = vector.load %arg7[%c6, %c0_32] : memref<16x128xf32, #tpu.memory_space<vmem>>, vector<2x128xf32>
    tpu.vector_store %arg7[%c6, %c0_32], %87 {strides = array<i32>} : memref<16x128xf32, #tpu.memory_space<vmem>>, vector<2x128xf32>,
    %89 = vector.extract_strided_slice %5 {offsets = [8, 0], sizes = [2, 128], strides = [1, 1]} : vector<16x128xf32> to vector<2x128xf32>
    %cst_33 = arith.constant dense<0.000000e+00> : vector<2x128xf32>
    %90 = tpu.matmul %87, %6, %cst_33 {dimension_numbers = #tpu.dot_dimension_numbers<[1], [0], [0], [1], [0, 0, 1, 1], [], []>} : vector<2x128xf32>, vector<128x128xf32>, vector<2x128xf32> -> vector<2x128xf32>
    %91 = arith.addf %89, %90 : vector<2x128xf32>
    %92 = math.tanh %91 : vector<2x128xf32>
    %93 = vector.broadcast %15 : vector<1x128xf32> to vector<2x128xf32>
    %94 = arith.mulf %92, %93 : vector<2x128xf32>
    %95 = vector.broadcast %18 : vector<1x128xf32> to vector<2x128xf32>
    %96 = arith.addf %94, %95 : vector<2x128xf32>
    %c96_i32_34 = arith.constant 96 : i32
    %97 = tpu.dynamic_rotate %96 by %c96_i32_34 dim 1 : vector<2x128xf32>, i32 -> vector<2x128xf32>
    %c64_i32_35 = arith.constant 64 : i32
    %98 = tpu.dynamic_rotate %96 by %c64_i32_35 dim 1 : vector<2x128xf32>, i32 -> vector<2x128xf32>
    %c32_i32_36 = arith.constant 32 : i32
    %99 = tpu.dynamic_rotate %96 by %c32_i32_36 dim 1 : vector<2x128xf32>, i32 -> vector<2x128xf32>
    %100 = arith.mulf %97, %85 : vector<2x128xf32>
    %101 = arith.mulf %96, %98 : vector<2x128xf32>
    %102 = arith.addf %100, %101 : vector<2x128xf32>
    %103 = math.tanh %102 : vector<2x128xf32>
    %104 = arith.mulf %99, %103 : vector<2x128xf32>
    %c8 = arith.constant 8 : index
    %c0_37 = arith.constant 0 : index
    %105 = vector.load %arg7[%c8, %c0_37] : memref<16x128xf32, #tpu.memory_space<vmem>>, vector<2x128xf32>
    tpu.vector_store %arg7[%c8, %c0_37], %104 {strides = array<i32>} : memref<16x128xf32, #tpu.memory_space<vmem>>, vector<2x128xf32>,
    %106 = vector.extract_strided_slice %5 {offsets = [10, 0], sizes = [2, 128], strides = [1, 1]} : vector<16x128xf32> to vector<2x128xf32>
    %cst_38 = arith.constant dense<0.000000e+00> : vector<2x128xf32>
    %107 = tpu.matmul %104, %6, %cst_38 {dimension_numbers = #tpu.dot_dimension_numbers<[1], [0], [0], [1], [0, 0, 1, 1], [], []>} : vector<2x128xf32>, vector<128x128xf32>, vector<2x128xf32> -> vector<2x128xf32>
    %108 = arith.addf %106, %107 : vector<2x128xf32>
    %109 = math.tanh %108 : vector<2x128xf32>
    %110 = vector.broadcast %15 : vector<1x128xf32> to vector<2x128xf32>
    %111 = arith.mulf %109, %110 : vector<2x128xf32>
    %112 = vector.broadcast %18 : vector<1x128xf32> to vector<2x128xf32>
    %113 = arith.addf %111, %112 : vector<2x128xf32>
    %c96_i32_39 = arith.constant 96 : i32
    %114 = tpu.dynamic_rotate %113 by %c96_i32_39 dim 1 : vector<2x128xf32>, i32 -> vector<2x128xf32>
    %c64_i32_40 = arith.constant 64 : i32
    %115 = tpu.dynamic_rotate %113 by %c64_i32_40 dim 1 : vector<2x128xf32>, i32 -> vector<2x128xf32>
    %c32_i32_41 = arith.constant 32 : i32
    %116 = tpu.dynamic_rotate %113 by %c32_i32_41 dim 1 : vector<2x128xf32>, i32 -> vector<2x128xf32>
    %117 = arith.mulf %114, %102 : vector<2x128xf32>
    %118 = arith.mulf %113, %115 : vector<2x128xf32>
    %119 = arith.addf %117, %118 : vector<2x128xf32>
    %120 = math.tanh %119 : vector<2x128xf32>
    %121 = arith.mulf %116, %120 : vector<2x128xf32>
    %c10 = arith.constant 10 : index
    %c0_42 = arith.constant 0 : index
    %122 = vector.load %arg7[%c10, %c0_42] : memref<16x128xf32, #tpu.memory_space<vmem>>, vector<2x128xf32>
    tpu.vector_store %arg7[%c10, %c0_42], %121 {strides = array<i32>} : memref<16x128xf32, #tpu.memory_space<vmem>>, vector<2x128xf32>,
    %123 = vector.extract_strided_slice %5 {offsets = [12, 0], sizes = [2, 128], strides = [1, 1]} : vector<16x128xf32> to vector<2x128xf32>
    %cst_43 = arith.constant dense<0.000000e+00> : vector<2x128xf32>
    %124 = tpu.matmul %121, %6, %cst_43 {dimension_numbers = #tpu.dot_dimension_numbers<[1], [0], [0], [1], [0, 0, 1, 1], [], []>} : vector<2x128xf32>, vector<128x128xf32>, vector<2x128xf32> -> vector<2x128xf32>
    %125 = arith.addf %123, %124 : vector<2x128xf32>
    %126 = math.tanh %125 : vector<2x128xf32>
    %127 = vector.broadcast %15 : vector<1x128xf32> to vector<2x128xf32>
    %128 = arith.mulf %126, %127 : vector<2x128xf32>
    %129 = vector.broadcast %18 : vector<1x128xf32> to vector<2x128xf32>
    %130 = arith.addf %128, %129 : vector<2x128xf32>
    %c96_i32_44 = arith.constant 96 : i32
    %131 = tpu.dynamic_rotate %130 by %c96_i32_44 dim 1 : vector<2x128xf32>, i32 -> vector<2x128xf32>
    %c64_i32_45 = arith.constant 64 : i32
    %132 = tpu.dynamic_rotate %130 by %c64_i32_45 dim 1 : vector<2x128xf32>, i32 -> vector<2x128xf32>
    %c32_i32_46 = arith.constant 32 : i32
    %133 = tpu.dynamic_rotate %130 by %c32_i32_46 dim 1 : vector<2x128xf32>, i32 -> vector<2x128xf32>
    %134 = arith.mulf %131, %119 : vector<2x128xf32>
    %135 = arith.mulf %130, %132 : vector<2x128xf32>
    %136 = arith.addf %134, %135 : vector<2x128xf32>
    %137 = math.tanh %136 : vector<2x128xf32>
    %138 = arith.mulf %133, %137 : vector<2x128xf32>
    %c12 = arith.constant 12 : index
    %c0_47 = arith.constant 0 : index
    %139 = vector.load %arg7[%c12, %c0_47] : memref<16x128xf32, #tpu.memory_space<vmem>>, vector<2x128xf32>
    tpu.vector_store %arg7[%c12, %c0_47], %138 {strides = array<i32>} : memref<16x128xf32, #tpu.memory_space<vmem>>, vector<2x128xf32>,
    %140 = vector.extract_strided_slice %5 {offsets = [14, 0], sizes = [2, 128], strides = [1, 1]} : vector<16x128xf32> to vector<2x128xf32>
    %cst_48 = arith.constant dense<0.000000e+00> : vector<2x128xf32>
    %141 = tpu.matmul %138, %6, %cst_48 {dimension_numbers = #tpu.dot_dimension_numbers<[1], [0], [0], [1], [0, 0, 1, 1], [], []>} : vector<2x128xf32>, vector<128x128xf32>, vector<2x128xf32> -> vector<2x128xf32>
    %142 = arith.addf %140, %141 : vector<2x128xf32>
    %143 = math.tanh %142 : vector<2x128xf32>
    %144 = vector.broadcast %15 : vector<1x128xf32> to vector<2x128xf32>
    %145 = arith.mulf %143, %144 : vector<2x128xf32>
    %146 = vector.broadcast %18 : vector<1x128xf32> to vector<2x128xf32>
    %147 = arith.addf %145, %146 : vector<2x128xf32>
    %c96_i32_49 = arith.constant 96 : i32
    %148 = tpu.dynamic_rotate %147 by %c96_i32_49 dim 1 : vector<2x128xf32>, i32 -> vector<2x128xf32>
    %c64_i32_50 = arith.constant 64 : i32
    %149 = tpu.dynamic_rotate %147 by %c64_i32_50 dim 1 : vector<2x128xf32>, i32 -> vector<2x128xf32>
    %c32_i32_51 = arith.constant 32 : i32
    %150 = tpu.dynamic_rotate %147 by %c32_i32_51 dim 1 : vector<2x128xf32>, i32 -> vector<2x128xf32>
    %151 = arith.mulf %148, %136 : vector<2x128xf32>
    %152 = arith.mulf %147, %149 : vector<2x128xf32>
    %153 = arith.addf %151, %152 : vector<2x128xf32>
    %154 = math.tanh %153 : vector<2x128xf32>
    %155 = arith.mulf %150, %154 : vector<2x128xf32>
    %c14 = arith.constant 14 : index
    %c0_52 = arith.constant 0 : index
    %156 = vector.load %arg7[%c14, %c0_52] : memref<16x128xf32, #tpu.memory_space<vmem>>, vector<2x128xf32>
    tpu.vector_store %arg7[%c14, %c0_52], %155 {strides = array<i32>} : memref<16x128xf32, #tpu.memory_space<vmem>>, vector<2x128xf32>,
    %c0_53 = arith.constant 0 : index
    %c0_54 = arith.constant 0 : index
    %157 = vector.load %arg7[%c0_53, %c0_54] : memref<16x128xf32, #tpu.memory_space<vmem>>, vector<16x128xf32>
    %158 = arith.negf %157 : vector<16x128xf32>
    %159 = math.exp %158 : vector<16x128xf32>
    %cst_55 = arith.constant 1.000000e+00 : f32
    %160 = vector.broadcast %cst_55 : f32 to vector<16x128xf32>
    %161 = arith.addf %160, %159 : vector<16x128xf32>
    %162 = arith.divf %160, %161 : vector<16x128xf32>
    %c0_56 = arith.constant 0 : index
    %c0_57 = arith.constant 0 : index
    %163 = vector.load %arg4[%c0_56, %c0_57] : memref<128x128xf32, #tpu.memory_space<vmem>>, vector<128x128xf32>
    %cst_58 = arith.constant dense<0.000000e+00> : vector<16x128xf32>
    %164 = tpu.matmul %162, %163, %cst_58 {dimension_numbers = #tpu.dot_dimension_numbers<[1], [0], [0], [1], [0, 0, 1, 1], [], []>} : vector<16x128xf32>, vector<128x128xf32>, vector<16x128xf32> -> vector<16x128xf32>
    %c0_59 = arith.constant 0 : index
    %c0_60 = arith.constant 0 : index
    %165 = vector.load %arg5[%c0_59, %c0_60] : memref<1x128xf32, #tpu.memory_space<vmem>>, vector<1x128xf32>
    %166 = vector.broadcast %165 : vector<1x128xf32> to vector<16x128xf32>
    %167 = arith.addf %164, %166 : vector<16x128xf32>
    %168 = arith.negf %167 : vector<16x128xf32>
    %169 = math.exp %168 : vector<16x128xf32>
    %cst_61 = arith.constant 1.000000e+00 : f32
    %170 = vector.broadcast %cst_61 : f32 to vector<16x128xf32>
    %171 = arith.addf %170, %169 : vector<16x128xf32>
    %172 = arith.divf %170, %171 : vector<16x128xf32>
    %c0_62 = arith.constant 0 : index
    %c0_63 = arith.constant 0 : index
    %173 = vector.load %arg6[%c0_62, %c0_63] : memref<16x128xf32, #tpu.memory_space<vmem>>, vector<16x128xf32>
    tpu.vector_store %arg6[%c0_62, %c0_63], %172 {strides = array<i32>} : memref<16x128xf32, #tpu.memory_space<vmem>>, vector<16x128xf32>,
    return
  }
}

</mosaic_0001>

<bundles_post_ra>
// kernel: _forward_jit.1
= control target key start
LH: loop header
LB: loop body
LE: loop exit
PB: predicated region body
PF: predicated region fallthrough
CT: control target
= control target key end

     0   :  { %11 = vsyncpa [#allocation4], 0  ;;  %s1030_s0 = inlined_call_operand.vmem [shape: f32[16,3], index: 0, kind: input, shape index: {}]   ;;  %s1031_s1 = inlined_call_operand.vmem [shape: f32[3,128], index: 1, kind: input, shape index: {}]   ;;  %s1032_s2 = inlined_call_operand.hbm [shape: f32[128,128], index: 2, kind: input, shape index: {}]   ;;  %s1033_s3 = inlined_call_operand.vmem [shape: f32[1,128], index: 3, kind: input, shape index: {}]   ;;  %s1034_s4 = inlined_call_operand.hbm [shape: f32[128,128], index: 4, kind: input, shape index: {}]   ;;  %s1035_s5 = inlined_call_operand.vmem [shape: f32[1,128], index: 5, kind: input, shape index: {}]   ;;  %s1036_s6 = inlined_call_operand.vmem [shape: f32[16,128], index: 6, kind: output, shape index: {}]  }
   0x1   :  { %s21_s23 = sshll.u32 %s1032_s2, 4  ;;  %s22_s23 = int_to_ptr.hbm [resolvable:$true] %s21_s23 }
   0x2   :  { %12 = vsyncpa [#allocation6], 0  ;;  %s726_s24 = smov [#allocation3]   ;;  %s36_s28 = sshll.u32 %s1034_s4, 4  ;;  %s37_s28 = int_to_ptr.hbm [resolvable:$true] %s36_s28 }
   0x3   :  { %s23_s25 = sshll.u32 %s726_s24, 4  ;;  %s727_s29 = smov 128   ;;  %s24_s25 = int_to_ptr.vmem [resolvable:$true] %s23_s25 }
   0x4   :  { %s728_s30 = smov 8   ;;  %s729_s7 = smov [#allocation5]  }
   0x5   :  { %29 = dma.hbm_to_vmem [thread:$0]  %s22_s23, 2048, %s24_s25, [#allocation4], %s727_s29, %s727_s29, %s728_s30  }
   0x6   :  { %s38_s8 = sshll.u32 %s729_s7, 4  ;;  %s39_s8 = int_to_ptr.vmem [resolvable:$true] %s38_s8 }
   0x7   :  { %44 = dma.hbm_to_vmem [thread:$0]  %s37_s28, 2048, %s39_s8, [#allocation6], %s727_s29, %s727_s29, %s728_s30  }
   0x8   :  { %722 = dma.done.wait [#allocation4], 2048  }
   0x9   :  { %723 = vsyncadd [#allocation4], 4294965248 }
   0xa   :  { %724 = dma.done.wait [#allocation6], 2048  }
   0xb   :  { %725 = vsyncadd [#allocation6], 4294965248  ;;  %v776_v0 = vld [vmem:[#allocation3 + $0x78] sm:$0xff]  ;;  %v778_v1 = vld [vmem:[#allocation3 + $0x70] sm:$0xff]  ;;  %vm69_vm0 = vcmask 1042432   ;;  %vm62_vm1 = vcmask 23552   ;;  %v112_v20 = vlaneseq }
   0xc   :  { %119 = vmatpush.msra.mxu2 %v776_v0  ;;  %203 = vmatpush.msra.mxu3 %v776_v0  ;;  %v782_v2 = vld [vmem:[#allocation3 + $0x68] sm:$0xff]  ;;  %v787_v3 = vld [vmem:[#allocation3 + $0x60] sm:$0xff]  ;;  %v57_v4 = vld [vmem:[%s1031_s1] sm:$0x7]  ;;  %v730_v18 = vmov 0.0   ;;  %v731_v26 = vmov 0.5  }
   0xd   :  { %299 = vmatpush.msra.mxu1 %v776_v0  ;;  %v55_v5 = vld [vmem:[%s1030_s0] sm:$0xff]  ;;  %v798_v6 = vld [vmem:[#allocation3 + $0x58] sm:$0xff]  ;;  %608 = vmatpush.msk.msra.mxu0 %vm69_vm0, %v57_v4  ;;  %v809_v8 = vld [vmem:[#allocation3 + $0x48] sm:$0xff]  ;;  %v113_v23 = vand.u32 127, %v112_v20  ;;  %s733_s12 = smov 96   ;;  %s734_s13 = smov 64  }
   0xe   :  { %120 = vmatpush.msra.mxu2 %v778_v1  ;;  %204 = vmatpush.msra.mxu3 %v778_v1  ;;  %v803_v7 = vld [vmem:[#allocation3 + $0x50] sm:$0xff]  ;;  %v815_v9 = vld [vmem:[#allocation3 + $0x40] sm:$0xff]  ;;  %v821_v10 = vld [vmem:[#allocation3 + $0x38] sm:$0xff] }
   0xf   :  { %300 = vmatpush.msra.mxu1 %v778_v1  ;;  %609 = vmatmul.msk.f32.vlgmr.msra.gmra.mxu0 %vm62_vm1, %v55_v5  ;;  %v827_v11 = vld [vmem:[#allocation3 + $0x30] sm:$0xff]  ;;  %v833_v12 = vld [vmem:[#allocation3 + $0x28] sm:$0xff]  ;;  %v839_v13 = vld [vmem:[#allocation3 + $0x20] sm:$0xff]  ;;  %vm114_vm2 = vcmp.ge.s32.totalorder %v113_v23, 64  ;;  %vm115_vm3 = vcmp.lt.s32.totalorder %v113_v23, 96 }
  0x10   :  { %121 = vmatpush.msra.mxu2 %v782_v2  ;;  %205 = vmatpush.msra.mxu3 %v782_v2  ;;  %v845_v14 = vld [vmem:[#allocation3 + $0x18] sm:$0xff]  ;;  %v851_v15 = vld [vmem:[#allocation3 + $0x10] sm:$0xff]  ;;  %v857_v16 = vld [vmem:[#allocation3 + $0x8] sm:$0xff] }
  0x11   :  { %301 = vmatpush.msra.mxu1 %v782_v2  ;;  %251 = vmatpush.msrb.mxu0 %v776_v0  ;;  %v863_v17 = vld [vmem:[#allocation3] sm:$0xff]  ;;  %v946_v19 = vld [vmem:[%s1033_s3] ss:$0 sm:$0xff]  ;;  %vm116_vm4 = vmand %vm114_vm2, %vm115_vm3  ;;  %s732_s3 = smov 32  }
  0x12   :  { %122 = vmatpush.msra.mxu2 %v787_v3  ;;  %206 = vmatpush.msra.mxu3 %v787_v3  ;;  %v952_v27 = vsel %vm116_vm4, 1.0, %v731_v26  ;;  %v954_v29 = vsel %vm116_vm4, 0.0, %v731_v26  ;;  %v534_v20 = vld [vmem:[#allocation5 + $0x78] sm:$0xff]  ;;  %v532_v23 = vld [vmem:[#allocation5 + $0x68] sm:$0xff] }
  0x13   :  { %302 = vmatpush.msra.mxu1 %v787_v3  ;;  %252 = vmatpush.msrb.mxu0 %v778_v1  ;;  %v528_v26 = vld [vmem:[#allocation5 + $0x48] sm:$0xff] }
  0x14   :  { %123 = vmatpush.msra.mxu2 %v798_v6  ;;  %207 = vmatpush.msra.mxu3 %v798_v6 }
  0x15   :  { %303 = vmatpush.msra.mxu1 %v798_v6  ;;  %253 = vmatpush.msrb.mxu0 %v782_v2 }
  0x16   :  { %124 = vmatpush.msra.mxu2 %v803_v7  ;;  %208 = vmatpush.msra.mxu3 %v803_v7 }
  0x17   :  { %304 = vmatpush.msra.mxu1 %v803_v7  ;;  %254 = vmatpush.msrb.mxu0 %v787_v3 }
  0x18   :  { %125 = vmatpush.msra.mxu2 %v809_v8  ;;  %209 = vmatpush.msra.mxu3 %v809_v8 }
  0x19   :  { %305 = vmatpush.msra.mxu1 %v809_v8  ;;  %255 = vmatpush.msrb.mxu0 %v798_v6 }
  0x1a   :  { %126 = vmatpush.msra.mxu2 %v815_v9  ;;  %210 = vmatpush.msra.mxu3 %v815_v9 }
  0x1b   :  { %306 = vmatpush.msra.mxu1 %v815_v9  ;;  %256 = vmatpush.msrb.mxu0 %v803_v7 }
  0x1c   :  { %127 = vmatpush.msra.mxu2 %v821_v10  ;;  %211 = vmatpush.msra.mxu3 %v821_v10 }
  0x1d   :  { %307 = vmatpush.msra.mxu1 %v821_v10  ;;  %257 = vmatpush.msrb.mxu0 %v809_v8 }
  0x1e   :  { %128 = vmatpush.msra.mxu2 %v827_v11  ;;  %212 = vmatpush.msra.mxu3 %v827_v11 }
  0x1f   :  { %308 = vmatpush.msra.mxu1 %v827_v11  ;;  %258 = vmatpush.msrb.mxu0 %v815_v9 }
  0x20   :  { %129 = vmatpush.msra.mxu2 %v833_v12  ;;  %213 = vmatpush.msra.mxu3 %v833_v12 }
  0x21   :  { %309 = vmatpush.msra.mxu1 %v833_v12  ;;  %259 = vmatpush.msrb.mxu0 %v821_v10 }
  0x22   :  { %130 = vmatpush.msra.mxu2 %v839_v13  ;;  %214 = vmatpush.msra.mxu3 %v839_v13 }
  0x23   :  { %310 = vmatpush.msra.mxu1 %v839_v13  ;;  %260 = vmatpush.msrb.mxu0 %v827_v11 }
  0x24   :  { %131 = vmatpush.msra.mxu2 %v845_v14  ;;  %215 = vmatpush.msra.mxu3 %v845_v14 }
  0x25   :  { %311 = vmatpush.msra.mxu1 %v845_v14  ;;  %261 = vmatpush.msrb.mxu0 %v833_v12 }
  0x26   :  { %132 = vmatpush.msra.mxu2 %v851_v15  ;;  %216 = vmatpush.msra.mxu3 %v851_v15 }
  0x27   :  { %312 = vmatpush.msra.mxu1 %v851_v15  ;;  %262 = vmatpush.msrb.mxu0 %v839_v13 }
  0x28   :  { %133 = vmatpush.msra.mxu2 %v857_v16  ;;  %217 = vmatpush.msra.mxu3 %v857_v16 }
  0x29   :  { %313 = vmatpush.msra.mxu1 %v857_v16  ;;  %263 = vmatpush.msrb.mxu0 %v845_v14 }
  0x2a   :  { %134 = vmatpush.msra.mxu2 %v863_v17  ;;  %218 = vmatpush.msra.mxu3 %v863_v17 }
  0x2b   :  { %135 = vmatmul.f32.vlgmr.msra.gmra.mxu2 %v730_v18  ;;  %314 = vmatpush.msra.mxu1 %v863_v17 }
  0x2c   :  { %155 = vmatpush.msrb.mxu2 %v776_v0  ;;  %383 = vmatpush.msrb.mxu3 %v776_v0 }
  0x2d   :  { %264 = vmatpush.msrb.mxu0 %v851_v15  ;;  %539 = vmatpush.msrb.mxu1 %v534_v20 }
  0x2e   :  { %156 = vmatpush.msrb.mxu2 %v778_v1  ;;  %384 = vmatpush.msrb.mxu3 %v778_v1 }
  0x2f   :  { %265 = vmatpush.msrb.mxu0 %v857_v16 }
  0x30   :  { %157 = vmatpush.msrb.mxu2 %v782_v2  ;;  %385 = vmatpush.msrb.mxu3 %v782_v2 }
  0x31   :  { %266 = vmatpush.msrb.mxu0 %v863_v17 }
  0x32   :  { %158 = vmatpush.msrb.mxu2 %v787_v3  ;;  %386 = vmatpush.msrb.mxu3 %v787_v3 }
  0x33   :  { %431 = vmatpush.msra.mxu0 %v776_v0 }
  0x34   :  { %159 = vmatpush.msrb.mxu2 %v798_v6  ;;  %387 = vmatpush.msrb.mxu3 %v798_v6 }
  0x35   :  { %432 = vmatpush.msra.mxu0 %v778_v1 }
  0x36   :  { %160 = vmatpush.msrb.mxu2 %v803_v7  ;;  %388 = vmatpush.msrb.mxu3 %v803_v7 }
  0x37   :  { %433 = vmatpush.msra.mxu0 %v782_v2 }
  0x38   :  { %161 = vmatpush.msrb.mxu2 %v809_v8  ;;  %389 = vmatpush.msrb.mxu3 %v809_v8 }
  0x39   :  { %434 = vmatpush.msra.mxu0 %v787_v3 }
  0x3a   :  { %162 = vmatpush.msrb.mxu2 %v815_v9  ;;  %390 = vmatpush.msrb.mxu3 %v815_v9 }
  0x3b   :  { %435 = vmatpush.msra.mxu0 %v798_v6 }
  0x3c   :  { %163 = vmatpush.msrb.mxu2 %v821_v10  ;;  %391 = vmatpush.msrb.mxu3 %v821_v10 }
  0x3d   :  { %436 = vmatpush.msra.mxu0 %v803_v7 }
  0x3e   :  { %164 = vmatpush.msrb.mxu2 %v827_v11  ;;  %392 = vmatpush.msrb.mxu3 %v827_v11 }
  0x3f   :  { %437 = vmatpush.msra.mxu0 %v809_v8 }
  0x40   :  { %165 = vmatpush.msrb.mxu2 %v833_v12  ;;  %393 = vmatpush.msrb.mxu3 %v833_v12 }
  0x41   :  { %438 = vmatpush.msra.mxu0 %v815_v9 }
  0x42   :  { %166 = vmatpush.msrb.mxu2 %v839_v13  ;;  %394 = vmatpush.msrb.mxu3 %v839_v13 }
  0x43   :  { %439 = vmatpush.msra.mxu0 %v821_v10 }
  0x44   :  { %167 = vmatpush.msrb.mxu2 %v845_v14  ;;  %395 = vmatpush.msrb.mxu3 %v845_v14 }
  0x45   :  { %440 = vmatpush.msra.mxu0 %v827_v11 }
  0x46   :  { %168 = vmatpush.msrb.mxu2 %v851_v15  ;;  %396 = vmatpush.msrb.mxu3 %v851_v15 }
  0x47   :  { %441 = vmatpush.msra.mxu0 %v833_v12 }
  0x48   :  { %169 = vmatpush.msrb.mxu2 %v857_v16  ;;  %397 = vmatpush.msrb.mxu3 %v857_v16 }
  0x49   :  { %442 = vmatpush.msra.mxu0 %v839_v13 }
  0x4a   :  { %170 = vmatpush.msrb.mxu2 %v863_v17  ;;  %398 = vmatpush.msrb.mxu3 %v863_v17 }
  0x4b   :  { %443 = vmatpush.msra.mxu0 %v845_v14 }
  0x4c   :  { %335 = vmatpush.msra.mxu2 %v776_v0  ;;  %v56_v0 = vld [vmem:[%s1030_s0 + $0x8] sm:$0xff] }
  0x4d   :  { %444 = vmatpush.msra.mxu0 %v851_v15 }
  0x4e   :  { %336 = vmatpush.msra.mxu2 %v778_v1  ;;  %610 = vmatmul.msk.f32.gmra.mxu0 %vm62_vm1, %v56_v0 }
  0x4f   :  { %445 = vmatpush.msra.mxu0 %v857_v16 }
  0x50   :  { %337 = vmatpush.msra.mxu2 %v782_v2 }
  0x51   :  { %446 = vmatpush.msra.mxu0 %v863_v17 }
  0x52   :  { %338 = vmatpush.msra.mxu2 %v787_v3 }
  0x54   :  { %339 = vmatpush.msra.mxu2 %v798_v6 }
  0x56   :  { %340 = vmatpush.msra.mxu2 %v803_v7 }
  0x58   :  { %341 = vmatpush.msra.mxu2 %v809_v8 }
  0x5a   :  { %342 = vmatpush.msra.mxu2 %v815_v9 }
  0x5c   :  { %343 = vmatpush.msra.mxu2 %v821_v10 }
  0x5e   :  { %344 = vmatpush.msra.mxu2 %v827_v11 }
  0x60   :  { %345 = vmatpush.msra.mxu2 %v833_v12 }
  0x62   :  { %346 = vmatpush.msra.mxu2 %v839_v13 }
  0x64   :  { %347 = vmatpush.msra.mxu2 %v845_v14 }
  0x66   :  { %348 = vmatpush.msra.mxu2 %v851_v15 }
  0x68   :  { %349 = vmatpush.msra.mxu2 %v857_v16 }
  0x6a   :  { %350 = vmatpush.msra.mxu2 %v863_v17 }
  0x8c   :  { %v90_v21 = vpop.f32.mrf.mxu0 }
  0x8d   :  { %v949_v22 = vadd.f32 %v946_v19, %v90_v21  ;;  %v533_v21 = vld [vmem:[#allocation5 + $0x70] sm:$0xff] }
  0x8e   :  { %540 = vmatpush.msrb.mxu1 %v533_v21 }
  0x90   :  { %541 = vmatpush.msrb.mxu1 %v532_v23 }
  0xae   :  { %v136_v24 = vpop.f32.mrf.mxu2 }
  0xaf   :  { %v139_v25 = vadd.f32 %v136_v24, %v949_v22  ;;  %v531_v24 = vld [vmem:[#allocation5 + $0x60] sm:$0xff] }
  0xb0   :  { %542 = vmatpush.msrb.mxu1 %v531_v24 }
  0xb1   :  { %626 = vtanh.f32 %v139_v25  ;;  %v529_v25 = vld [vmem:[#allocation5 + $0x50] sm:$0xff] }
  0xb7   :  { %v627_v28 = vpop.eup %626 }
  0xb8   :  { %v141_v30 = vmul.f32 %v627_v28, %v952_v27  ;;  %v527_v28 = vld [vmem:[#allocation5 + $0x40] sm:$0xff] }
  0xba   :  { %v142_v31 = vadd.f32 %v141_v30, %v954_v29 }
  0xbc   :  { %147 = vrot.lane.b32.xlu1 %v142_v31, %s732_s3  ;;  %143 = vrot.lane.b32.xlu0 %v142_v31, %s733_s12 }
  0xc4   :  { %145 = vrot.lane.b32.xlu0 %v142_v31, %s734_s13 }
  0xcb   :  { %v977_v11 = vpop.f32.mrf.mxu0 }
 0x12e   :  { %v144_v32 = vpop.permute.xlu0 %143  ;;  %v148_v38 = vpop.permute.xlu1 %147 }
 0x12f   :  { %v149_v34 = vmul.f32 0.0, %v144_v32 }
 0x136   :  { %v146_v33 = vpop.permute.xlu0 %145 }
 0x137   :  { %v150_v35 = vmul.f32 %v146_v33, %v142_v31  ;;  %v526_v31 = vld [vmem:[#allocation5 + $0x38] sm:$0xff] }
 0x139   :  { %v151_v36 = vadd.f32 %v150_v35, %v149_v34  ;;  %v525_v34 = vld [vmem:[#allocation5 + $0x30] sm:$0xff] }
 0x13b   :  { %628 = vtanh.f32 %v151_v36 }
 0x141   :  { %v629_v37 = vpop.eup %628 }
 0x142   :  { %v153_v39 = vmul.f32 %v629_v37, %v148_v38 }
 0x144   :  { %154 = vst [vmem:[#allocation2] sm:$0x3] %v153_v39  ;;  %171 = vmatmul.f32.vlgmr.msrb.gmra.mxu2 %v153_v39  ;;  %v523_v39 = vld [vmem:[#allocation5 + $0x20] sm:$0xff] }
 0x1c7   :  { %v172_v40 = vpop.f32.mrf.mxu2 }
 0x1c8   :  { %v176_v41 = vrot.slane %v172_v40, 6 }
 0x1ca   :  { %v178_v42 = vadd.f32 %v176_v41, %v949_v22  ;;  %v522_v41 = vld [vmem:[#allocation5 + $0x18] sm:$0xff] }
 0x1cc   :  { %630 = vtanh.f32 %v178_v42  ;;  %v521_v42 = vld [vmem:[#allocation5 + $0x10] sm:$0xff] }
 0x1d2   :  { %v631_v43 = vpop.eup %630 }
 0x1d3   :  { %v180_v44 = vmul.f32 %v631_v43, %v952_v27  ;;  %v520_v43 = vld [vmem:[#allocation5 + $0x8] sm:$0xff] }
 0x1d5   :  { %v181_v45 = vadd.f32 %v180_v44, %v954_v29  ;;  %v519_v44 = vld [vmem:[#allocation5] sm:$0xff] }
 0x1d7   :  { %v183_v46 = vrot.slane %v181_v45, 2 }
 0x1d9   :  { %185 = vrot.lane.b32.xlu2 %v183_v46, %s733_s12  ;;  %187 = vrot.lane.b32.xlu1 %v183_v46, %s734_s13 }
 0x1e1   :  { %189 = vrot.lane.b32.xlu2 %v183_v46, %s732_s3 }
 0x233   :  { %v186_v49 = vpop.permute.xlu2 %185 }
 0x234   :  { %v191_v51 = vmul.f32 %v186_v49, %v151_v36  ;;  %v524_v36 = vld [vmem:[#allocation5 + $0x28] sm:$0xff] }
 0x23b   :  { %v190_v55 = vpop.permute.xlu2 %189 }
 0x24b   :  { %v188_v47 = vpop.permute.xlu1 %187 }
 0x24c   :  { %v193_v48 = vrot.slane %v188_v47, 6 }
 0x24e   :  { %v195_v50 = vmul.f32 %v193_v48, %v181_v45 }
 0x250   :  { %v197_v52 = vrot.slane %v195_v50, 2 }
 0x252   :  { %v199_v53 = vadd.f32 %v197_v52, %v191_v51 }
 0x254   :  { %632 = vtanh.f32 %v199_v53 }
 0x25a   :  { %v633_v54 = vpop.eup %632 }
 0x25b   :  { %v201_v56 = vmul.f32 %v633_v54, %v190_v55 }
 0x25d   :  { %202 = vst [vmem:[#allocation2 + $0x2] sm:$0x3] %v201_v56  ;;  %219 = vmatmul.f32.vlgmr.msra.gmra.mxu3 %v201_v56 }
 0x2e0   :  { %v220_v57 = vpop.f32.mrf.mxu3 }
 0x2e1   :  { %v224_v58 = vrot.slane %v220_v57, 4 }
 0x2e3   :  { %v226_v59 = vadd.f32 %v224_v58, %v949_v22 }
 0x2e5   :  { %634 = vtanh.f32 %v226_v59 }
 0x2eb   :  { %v635_v60 = vpop.eup %634 }
 0x2ec   :  { %v228_v61 = vmul.f32 %v635_v60, %v952_v27 }
 0x2ee   :  { %v229_v62 = vadd.f32 %v228_v61, %v954_v29 }
 0x2f0   :  { %v231_v63 = vrot.slane %v229_v62, 4 }
 0x2f2   :  { %237 = vrot.lane.b32.xlu2 %v231_v63, %s732_s3  ;;  %233 = vrot.lane.b32.xlu1 %v231_v63, %s733_s12 }
 0x2f3   :  { %235 = vrot.lane.b32.xlu0 %v231_v63, %s734_s13 }
 0x34c   :  { %v238_v9 = vpop.permute.xlu2 %237 }
 0x364   :  { %v234_v3 = vpop.permute.xlu1 %233 }
 0x365   :  { %v236_v1 = vpop.permute.xlu0 %235  ;;  %v239_v5 = vmul.f32 %v234_v3, %v199_v53 }
 0x366   :  { %v241_v2 = vrot.slane %v236_v1, 4 }
 0x368   :  { %v243_v4 = vmul.f32 %v241_v2, %v229_v62  ;;  %v990_v62 = vadd.f32 %v946_v19, %v977_v11  ;;  %v1001_v19 = vld [vmem:[%s1035_s5] ss:$0 sm:$0xff] }
 0x36a   :  { %v245_v6 = vrot.slane %v243_v4, 4 }
 0x36c   :  { %v247_v7 = vadd.f32 %v245_v6, %v239_v5 }
 0x36e   :  { %636 = vtanh.f32 %v247_v7 }
 0x374   :  { %v637_v8 = vpop.eup %636 }
 0x375   :  { %v249_v10 = vmul.f32 %v637_v8, %v238_v9 }
 0x377   :  { %250 = vst [vmem:[#allocation2 + $0x4] sm:$0x3] %v249_v10  ;;  %267 = vmatmul.f32.vlgmr.msrb.gmra.mxu0 %v249_v10 }
 0x3f4   :  { %v268_v12 = vpop.f32.mrf.mxu0 }
 0x3f5   :  { %v272_v13 = vrot.slane %v268_v12, 2 }
 0x3f7   :  { %v274_v14 = vadd.f32 %v272_v13, %v949_v22  ;;  %v530_v22 = vld [vmem:[#allocation5 + $0x58] sm:$0xff] }
 0x3f8   :  { %543 = vmatpush.msrb.mxu1 %v530_v22 }
 0x3f9   :  { %638 = vtanh.f32 %v274_v14 }
 0x3fa   :  { %544 = vmatpush.msrb.mxu1 %v529_v25 }
 0x3fc   :  { %545 = vmatpush.msrb.mxu1 %v528_v26 }
 0x3fe   :  { %546 = vmatpush.msrb.mxu1 %v527_v28 }
 0x3ff   :  { %v639_v15 = vpop.eup %638 }
 0x400   :  { %v276_v16 = vmul.f32 %v639_v15, %v952_v27  ;;  %547 = vmatpush.msrb.mxu1 %v526_v31 }
 0x402   :  { %v277_v17 = vadd.f32 %v276_v16, %v954_v29  ;;  %548 = vmatpush.msrb.mxu1 %v525_v34 }
 0x404   :  { %v279_v18 = vrot.slane %v277_v17, 6  ;;  %549 = vmatpush.msrb.mxu1 %v524_v36 }
 0x406   :  { %285 = vrot.lane.b32.xlu2 %v279_v18, %s732_s3  ;;  %281 = vrot.lane.b32.xlu1 %v279_v18, %s733_s12 }
 0x407   :  { %283 = vrot.lane.b32.xlu0 %v279_v18, %s734_s13  ;;  %550 = vmatpush.msrb.mxu1 %v523_v39 }
 0x409   :  { %551 = vmatpush.msrb.mxu1 %v522_v41 }
 0x40b   :  { %552 = vmatpush.msrb.mxu1 %v521_v42 }
 0x40d   :  { %553 = vmatpush.msrb.mxu1 %v520_v43 }
 0x40f   :  { %554 = vmatpush.msrb.mxu1 %v519_v44 }
 0x460   :  { %v286_v46 = vpop.permute.xlu2 %285 }
 0x478   :  { %v282_v33 = vpop.permute.xlu1 %281 }
 0x479   :  { %v284_v30 = vpop.permute.xlu0 %283  ;;  %v287_v37 = vmul.f32 %v282_v33, %v247_v7 }
 0x47a   :  { %v289_v32 = vrot.slane %v284_v30, 2 }
 0x47c   :  { %v291_v35 = vmul.f32 %v289_v32, %v277_v17 }
 0x47e   :  { %v293_v38 = vrot.slane %v291_v35, 6 }
 0x480   :  { %v985_v40 = vadd.f32 %v293_v38, %v287_v37 }
 0x482   :  { %640 = vtanh.f32 %v985_v40 }
 0x488   :  { %v641_v45 = vpop.eup %640 }
 0x489   :  { %v297_v47 = vmul.f32 %v641_v45, %v286_v46 }
 0x48b   :  { %298 = vst [vmem:[#allocation2 + $0x6] sm:$0x3] %v297_v47  ;;  %315 = vmatmul.f32.vlgmr.msra.gmra.mxu1 %v297_v47 }
 0x492   :  { %v479_v48 = vld [vmem:[#allocation2] sm:$0xff] }
 0x493   :  { %v611_v49 = vmul.f32 -1.442695, %v479_v48 }
 0x495   :  { %642 = vpow2.f32 %v611_v49 }
 0x49b   :  { %v643_v50 = vpop.eup %642 }
 0x49c   :  { %v487_v51 = vadd.f32 1.0, %v643_v50 }
 0x49e   :  { %644 = vrcp.f32 %v487_v51  ;;  %v500_v55 = vand.u32 2147483648, %v487_v51  ;;  %v498_v57 = vand.u32 2147483647, %v487_v51  ;;  %vm494_vm6 = vweird.f32 %v487_v51 }
 0x4a0   :  { %v501_v59 = vor.u32 1.1754944e-38, %v500_v55  ;;  %vm499_vm8 = vcmp.eq.f32.partialorder %v498_v57, 8.507059e+37 }
 0x4a4   :  { %v645_v52 = vpop.eup %644 }
 0x4a5   :  { %v490_v53 = vmul.f32 %v645_v52, %v487_v51  ;;  %vm495_vm5 = vweird.f32 %v645_v52 }
 0x4a6   :  { %vm496_vm7 = vmor %vm494_vm6, %vm495_vm5 }
 0x4a7   :  { %v491_v54 = vsub.f32 1.0, %v490_v53 }
 0x4a9   :  { %v492_v56 = vmul.f32 %v645_v52, %v491_v54 }
 0x4ab   :  { %v493_v58 = vadd.f32 %v645_v52, %v492_v56 }
 0x4ad   :  { %v497_v60 = vsel %vm496_vm7, %v645_v52, %v493_v58 }
 0x4ae   :  { %v502_v61 = vsel %vm499_vm8, %v501_v59, %v497_v60 }
 0x4af   :  { %555 = vmatmul.f32.vlgmr.msrb.gmra.mxu1 %v502_v61 }
 0x508   :  { %v316_v63 = vpop.f32.mrf.mxu1 }
 0x509   :  { %v319_v0 = vadd.f32 %v316_v63, %v990_v62 }
 0x50b   :  { %646 = vtanh.f32 %v319_v0 }
 0x511   :  { %v647_v1 = vpop.eup %646 }
 0x512   :  { %v321_v2 = vmul.f32 %v647_v1, %v952_v27 }
 0x514   :  { %v322_v3 = vadd.f32 %v321_v2, %v954_v29 }
 0x516   :  { %327 = vrot.lane.b32.xlu2 %v322_v3, %s732_s3  ;;  %325 = vrot.lane.b32.xlu1 %v322_v3, %s734_s13 }
 0x517   :  { %323 = vrot.lane.b32.xlu0 %v322_v3, %s733_s12 }
 0x52c   :  { %v556_v4 = vpop.f32.mrf.mxu1 }
 0x52d   :  { %v557_v5 = vadd.f32 %v1001_v19, %v556_v4 }
 0x52f   :  { %v613_v6 = vmul.f32 -1.442695, %v557_v5 }
 0x531   :  { %648 = vpow2.f32 %v613_v6 }
 0x537   :  { %v649_v7 = vpop.eup %648 }
 0x538   :  { %v568_v8 = vadd.f32 1.0, %v649_v7 }
 0x53a   :  { %650 = vrcp.f32 %v568_v8  ;;  %v581_v12 = vand.u32 2147483648, %v568_v8  ;;  %v579_v14 = vand.u32 2147483647, %v568_v8  ;;  %vm575_vm10 = vweird.f32 %v568_v8 }
 0x53c   :  { %v582_v16 = vor.u32 1.1754944e-38, %v581_v12  ;;  %vm580_vm12 = vcmp.eq.f32.partialorder %v579_v14, 8.507059e+37 }
 0x540   :  { %v651_v9 = vpop.eup %650 }
 0x541   :  { %v571_v10 = vmul.f32 %v651_v9, %v568_v8  ;;  %vm576_vm9 = vweird.f32 %v651_v9 }
 0x542   :  { %vm577_vm11 = vmor %vm575_vm10, %vm576_vm9 }
 0x543   :  { %v572_v11 = vsub.f32 1.0, %v571_v10 }
 0x545   :  { %v573_v13 = vmul.f32 %v651_v9, %v572_v11 }
 0x547   :  { %v574_v15 = vadd.f32 %v651_v9, %v573_v13 }
 0x549   :  { %v578_v17 = vsel %vm577_vm11, %v651_v9, %v574_v15 }
 0x54a   :  { %v583_v18 = vsel %vm580_vm12, %v582_v16, %v578_v17 }
 0x54b   :  { %600 = vst [vmem:[%s1036_s6] sm:$0xff] %v583_v18 }
 0x570   :  { %v328_v26 = vpop.permute.xlu2 %327 }
 0x588   :  { %v326_v20 = vpop.permute.xlu1 %325 }
 0x589   :  { %v330_v21 = vmul.f32 %v326_v20, %v322_v3  ;;  %v324_v23 = vpop.permute.xlu0 %323 }
 0x58a   :  { %v329_v24 = vmul.f32 %v324_v23, %v985_v40 }
 0x58c   :  { %v331_v22 = vadd.f32 %v330_v21, %v329_v24 }
 0x58e   :  { %652 = vtanh.f32 %v331_v22 }
 0x594   :  { %v653_v25 = vpop.eup %652 }
 0x595   :  { %v333_v28 = vmul.f32 %v653_v25, %v328_v26 }
 0x597   :  { %334 = vst [vmem:[#allocation2 + $0x8] sm:$0x3] %v333_v28  ;;  %351 = vmatmul.f32.vlgmr.msra.gmra.mxu2 %v333_v28 }
 0x61a   :  { %v352_v30 = vpop.f32.mrf.mxu2 }
 0x61b   :  { %v356_v31 = vrot.slane %v352_v30, 6 }
 0x61d   :  { %v358_v32 = vadd.f32 %v356_v31, %v990_v62 }
 0x61f   :  { %654 = vtanh.f32 %v358_v32 }
 0x625   :  { %v655_v33 = vpop.eup %654 }
 0x626   :  { %v360_v34 = vmul.f32 %v655_v33, %v952_v27 }
 0x628   :  { %v361_v35 = vadd.f32 %v360_v34, %v954_v29 }
 0x62a   :  { %v363_v36 = vrot.slane %v361_v35, 2 }
 0x62c   :  { %369 = vrot.lane.b32.xlu2 %v363_v36, %s732_s3  ;;  %365 = vrot.lane.b32.xlu1 %v363_v36, %s733_s12 }
 0x62d   :  { %367 = vrot.lane.b32.xlu0 %v363_v36, %s734_s13 }
 0x686   :  { %v370_v45 = vpop.permute.xlu2 %369 }
 0x69e   :  { %v366_v39 = vpop.permute.xlu1 %365 }
 0x69f   :  { %v368_v37 = vpop.permute.xlu0 %367  ;;  %v371_v41 = vmul.f32 %v366_v39, %v331_v22 }
 0x6a0   :  { %v373_v38 = vrot.slane %v368_v37, 6 }
 0x6a2   :  { %v375_v40 = vmul.f32 %v373_v38, %v361_v35 }
 0x6a4   :  { %v377_v42 = vrot.slane %v375_v40, 2 }
 0x6a6   :  { %v379_v43 = vadd.f32 %v377_v42, %v371_v41 }
 0x6a8   :  { %656 = vtanh.f32 %v379_v43 }
 0x6ae   :  { %v657_v44 = vpop.eup %656 }
 0x6af   :  { %v381_v46 = vmul.f32 %v657_v44, %v370_v45 }
 0x6b1   :  { %382 = vst [vmem:[#allocation2 + $0xa] sm:$0x3] %v381_v46  ;;  %399 = vmatmul.f32.vlgmr.msrb.gmra.mxu3 %v381_v46 }
 0x734   :  { %v400_v47 = vpop.f32.mrf.mxu3 }
 0x735   :  { %v404_v48 = vrot.slane %v400_v47, 4 }
 0x737   :  { %v406_v49 = vadd.f32 %v404_v48, %v990_v62 }
 0x739   :  { %658 = vtanh.f32 %v406_v49 }
 0x73f   :  { %v659_v50 = vpop.eup %658 }
 0x740   :  { %v408_v51 = vmul.f32 %v659_v50, %v952_v27 }
 0x742   :  { %v409_v52 = vadd.f32 %v408_v51, %v954_v29 }
 0x744   :  { %v411_v53 = vrot.slane %v409_v52, 4 }
 0x746   :  { %417 = vrot.lane.b32.xlu2 %v411_v53, %s732_s3  ;;  %413 = vrot.lane.b32.xlu1 %v411_v53, %s733_s12 }
 0x747   :  { %415 = vrot.lane.b32.xlu0 %v411_v53, %s734_s13 }
 0x7a0   :  { %v418_v63 = vpop.permute.xlu2 %417 }
 0x7b8   :  { %v414_v56 = vpop.permute.xlu1 %413 }
 0x7b9   :  { %v416_v54 = vpop.permute.xlu0 %415  ;;  %v419_v58 = vmul.f32 %v414_v56, %v379_v43 }
 0x7ba   :  { %v421_v55 = vrot.slane %v416_v54, 4 }
 0x7bc   :  { %v423_v57 = vmul.f32 %v421_v55, %v409_v52 }
 0x7be   :  { %v425_v59 = vrot.slane %v423_v57, 4 }
 0x7c0   :  { %v427_v60 = vadd.f32 %v425_v59, %v419_v58 }
 0x7c2   :  { %660 = vtanh.f32 %v427_v60 }
 0x7c8   :  { %v661_v61 = vpop.eup %660 }
 0x7c9   :  { %v429_v0 = vmul.f32 %v661_v61, %v418_v63 }
 0x7cb   :  { %430 = vst [vmem:[#allocation2 + $0xc] sm:$0x3] %v429_v0  ;;  %447 = vmatmul.f32.vlgmr.msra.gmra.mxu0 %v429_v0 }
 0x848   :  { %v448_v1 = vpop.f32.mrf.mxu0 }
 0x849   :  { %v452_v2 = vrot.slane %v448_v1, 2 }
 0x84b   :  { %v454_v3 = vadd.f32 %v452_v2, %v990_v62 }
 0x84d   :  { %662 = vtanh.f32 %v454_v3 }
 0x853   :  { %v663_v4 = vpop.eup %662 }
 0x854   :  { %v456_v5 = vmul.f32 %v663_v4, %v952_v27 }
 0x856   :  { %v457_v6 = vadd.f32 %v456_v5, %v954_v29 }
 0x858   :  { %v459_v7 = vrot.slane %v457_v6, 6 }
 0x85a   :  { %465 = vrot.lane.b32.xlu2 %v459_v7, %s732_s3  ;;  %461 = vrot.lane.b32.xlu1 %v459_v7, %s733_s12 }
 0x85b   :  { %463 = vrot.lane.b32.xlu0 %v459_v7, %s734_s13 }
 0x8b4   :  { %v466_v15 = vpop.permute.xlu2 %465 }
 0x8cc   :  { %v462_v10 = vpop.permute.xlu1 %461 }
 0x8cd   :  { %v464_v8 = vpop.permute.xlu0 %463  ;;  %v467_v12 = vmul.f32 %v462_v10, %v427_v60 }
 0x8ce   :  { %v469_v9 = vrot.slane %v464_v8, 2 }
 0x8d0   :  { %v471_v11 = vmul.f32 %v469_v9, %v457_v6 }
 0x8d2   :  { %v473_v13 = vrot.slane %v471_v11, 6 }
 0x8d4   :  { %v475_v62 = vadd.f32 %v473_v13, %v467_v12 }
 0x8d6   :  { %664 = vtanh.f32 %v475_v62 }
 0x8dc   :  { %v665_v14 = vpop.eup %664 }
 0x8dd   :  { %v477_v27 = vmul.f32 %v665_v14, %v466_v15 }
 0x8df   :  { %478 = vst [vmem:[#allocation2 + $0xe] sm:$0x3] %v477_v27 }
 0x8e6   :  { %v480_v29 = vld [vmem:[#allocation2 + $0x8] sm:$0xff] }
 0x8e7   :  { %v612_v16 = vmul.f32 -1.442695, %v480_v29 }
 0x8e9   :  { %666 = vpow2.f32 %v612_v16 }
 0x8ef   :  { %v667_v17 = vpop.eup %666 }
 0x8f0   :  { %v488_v18 = vadd.f32 1.0, %v667_v17 }
 0x8f2   :  { %668 = vrcp.f32 %v488_v18  ;;  %v515_v24 = vand.u32 2147483648, %v488_v18  ;;  %v513_v25 = vand.u32 2147483647, %v488_v18  ;;  %vm509_vm14 = vweird.f32 %v488_v18 }
 0x8f4   :  { %v516_v28 = vor.u32 1.1754944e-38, %v515_v24  ;;  %vm514_vm0 = vcmp.eq.f32.partialorder %v513_v25, 8.507059e+37 }
 0x8f8   :  { %v669_v20 = vpop.eup %668 }
 0x8f9   :  { %v505_v21 = vmul.f32 %v669_v20, %v488_v18  ;;  %vm510_vm13 = vweird.f32 %v669_v20 }
 0x8fa   :  { %vm511_vm15 = vmor %vm509_vm14, %vm510_vm13 }
 0x8fb   :  { %v506_v23 = vsub.f32 1.0, %v505_v21 }
 0x8fd   :  { %v507_v22 = vmul.f32 %v669_v20, %v506_v23 }
 0x8ff   :  { %v508_v26 = vadd.f32 %v669_v20, %v507_v22 }
 0x901   :  { %v512_v30 = vsel %vm511_vm15, %v669_v20, %v508_v26 }
 0x902   :  { %v517_v31 = vsel %vm514_vm0, %v516_v28, %v512_v30 }
 0x903   :  { %558 = vmatmul.f32.gmra.mxu1 %v517_v31 }
 0x980   :  { %v559_v32 = vpop.f32.mrf.mxu1 }
 0x981   :  { %v560_v33 = vadd.f32 %v1001_v19, %v559_v32 }
 0x983   :  { %v614_v34 = vmul.f32 -1.442695, %v560_v33 }
 0x985   :  { %670 = vpow2.f32 %v614_v34 }
 0x98b   :  { %v671_v35 = vpop.eup %670 }
 0x98c   :  { %v569_v36 = vadd.f32 1.0, %v671_v35 }
 0x98e   :  { %672 = vrcp.f32 %v569_v36  ;;  %v596_v40 = vand.u32 2147483648, %v569_v36  ;;  %v594_v42 = vand.u32 2147483647, %v569_v36  ;;  %vm590_vm2 = vweird.f32 %v569_v36 }
 0x990   :  { %v597_v44 = vor.u32 1.1754944e-38, %v596_v40  ;;  %vm595_vm4 = vcmp.eq.f32.partialorder %v594_v42, 8.507059e+37 }
 0x994   :  { %v673_v37 = vpop.eup %672 }
 0x995   :  { %v586_v38 = vmul.f32 %v673_v37, %v569_v36  ;;  %vm591_vm1 = vweird.f32 %v673_v37 }
 0x996   :  { %vm592_vm3 = vmor %vm590_vm2, %vm591_vm1 }
 0x997   :  { %v587_v39 = vsub.f32 1.0, %v586_v38 }
 0x999   :  { %v588_v41 = vmul.f32 %v673_v37, %v587_v39 }
 0x99b   :  { %v589_v43 = vadd.f32 %v673_v37, %v588_v41 }
 0x99d   :  { %v593_v45 = vsel %vm592_vm3, %v673_v37, %v589_v43 }
 0x99e   :  { %v598_v46 = vsel %vm595_vm4, %v597_v44, %v593_v45 }
 0x99f   :  { %601 = vst [vmem:[%s1036_s6 + $0x8] sm:$0xff] %v598_v46 }
 0x9a0   :  { %606 = vsyncpa [#allocation4], 1 }
 0x9a1   :  { %607 = vsyncpa [#allocation6], 1 }

</bundles_post_ra>
